<compile_context>
chip_gen: v7x
topology: tpu7x:2x2x1
jax: 0.10.0
libtpu: 0.0.40
codegen_flags: <defaults>
</compile_context>

<pallas_src>
import functools

import jax
import jax.numpy as jnp
from jax.experimental import pallas as pl
from jax.experimental.pallas import tpu as pltpu


def _dropout_kernel(seed_ref, x_ref, o_ref, *, p, rows_per_tile):
    tb, h = x_ref.shape

    # ---- stateless counter-based PRNG (plain 32-bit VPU ops) -----------------
    # Global element index for this tile (unique per element, per grid step).
    row0 = (pl.program_id(0) * rows_per_tile).astype(jnp.uint32)
    rows = jax.lax.broadcasted_iota(jnp.int32, (tb, h), 0).astype(jnp.uint32)
    cols = jax.lax.broadcasted_iota(jnp.int32, (tb, h), 1).astype(jnp.uint32)
    idx = (row0 + rows) * jnp.uint32(h) + cols

    seed = seed_ref[0].astype(jnp.uint32)
    z = idx + seed * jnp.uint32(0x9E3779B9)
    # lowbias32 / splitmix32-style mixer: good avalanche on sequential counters.
    z = (z ^ (z >> 16)) * jnp.uint32(0x7FEB352D)
    z = (z ^ (z >> 15)) * jnp.uint32(0x846CA68B)
    bits = z ^ (z >> 16)

    # ---- Bernoulli(p) drop via integer threshold (no float conversion) ------
    thr = jnp.uint32(min(int(round(p * 4294967296.0)), 0xFFFFFFFF))
    keep = bits >= thr  # P(keep) = 1 - p

    # ---- select + scale in the input dtype -----------------------------------
    x = x_ref[...]
    scale = jnp.asarray(1.0 / (1.0 - p), dtype=x.dtype)
    o_ref[...] = jnp.where(keep, x * scale, jnp.zeros_like(x))


def _choose_row_tile(B, H, itemsize, target_bytes=2 * 1024 * 1024):
    """Rows per block: ~2 MiB per buffer, multiple of 8 (sublane), divides B."""
    if B <= 8:
        return B
    rows = (target_bytes // max(1, H * itemsize)) // 8 * 8
    rows = max(8, min(int(rows), B))
    while rows > 8 and B % rows != 0:
        rows -= 8
    if B % rows != 0:
        return B  # no clean multiple-of-8 divisor: single full block
    return rows


def dropout(x, *, p=0.5, seed=0, training=True, block_rows=None):
    """Pallas implementation of the Dropout module's forward pass."""
    if not training or p <= 0.0:
        return x
    if not (0.0 < p < 1.0):
        raise ValueError(f"dropout probability must be in [0, 1), got {p}")

    B, H = x.shape
    tb = block_rows if block_rows is not None else _choose_row_tile(B, H, x.dtype.itemsize)
    tb = min(tb, B)
    if tb != B and (tb % 8 != 0 or B % tb != 0):
        tb = B  # keep blocks full & aligned; fall back to one block

    seed_arr = jnp.asarray([seed], dtype=jnp.int32)
    kernel = functools.partial(_dropout_kernel, p=p, rows_per_tile=tb)

    return pl.pallas_call(
        kernel,
        out_shape=jax.ShapeDtypeStruct((B, H), x.dtype),
        grid=(pl.cdiv(B, tb),),
        in_specs=[
            pl.BlockSpec(memory_space=pltpu.MemorySpace.SMEM),   # seed scalar
            pl.BlockSpec((tb, H), lambda i: (i, 0)),             # row tile of x
        ],
        out_specs=pl.BlockSpec((tb, H), lambda i: (i, 0)),
        compiler_params=pltpu.CompilerParams(
            dimension_semantics=("parallel",),
        ),
    )(seed_arr, x)


if __name__ == "__main__":
    key = jax.random.PRNGKey(0)
    # MLP-style activations: small but multi-tile (block_rows=16 -> grid of 4).
    B, H = 64, 128
    x = jax.random.normal(key, (B, H), dtype=jnp.float32)

    p = 0.5
    y = dropout(x, p=p, seed=1234, training=True, block_rows=16)
    y = jax.block_until_ready(y)

    # Surviving elements must equal x * 1/(1-p) exactly (up to fp rounding).
    kept = y != 0.0
    scale = 1.0 / (1.0 - p)
    assert jnp.allclose(jnp.where(kept, y, 0.0),
                        jnp.where(kept, x * scale, 0.0), atol=1e-5, rtol=1e-5)

    # Drop rate should be roughly p.
    drop_frac = 1.0 - float(jnp.mean(kept.astype(jnp.float32)))
    assert 0.3 < drop_frac < 0.7, drop_frac

    # Per-tile seeding: masks must differ between row tiles.
    assert not bool(jnp.array_equal(kept[0:16], kept[16:32]))

    # Eval mode is identity.
    y_eval = jax.block_until_ready(dropout(x, p=p, training=False))
    assert jnp.array_equal(y_eval, x)

    print("KERNEL_OK")
</pallas_src>

<mosaic_0001>
module attributes {stable_mosaic.version = 11 : i64} {
  func.func @_dropout_kernel(%arg0: i32, %arg1: memref<1xi32, #tpu.memory_space<smem>>, %arg2: memref<16x128xf32, #tpu.memory_space<vmem>>, %arg3: memref<16x128xf32, #tpu.memory_space<vmem>>) attributes {dimension_semantics = [#tpu.dimension_semantics<parallel>], iteration_bounds = array<i64: 4>, scalar_prefetch = 0 : i64, scratch_operands = 0 : i64, tpu.core_type = #tpu.core_type<tc>, window_params = [{transform_indices = @transform_0, window_bounds = array<i64: 1>}, {transform_indices = @transform_1, window_bounds = array<i64: 16, 128>}, {transform_indices = @transform_2, window_bounds = array<i64: 16, 128>}]} {
    %c16_i32 = arith.constant 16 : i32
    %0 = arith.muli %arg0, %c16_i32 : i32
    %1 = tpu.iota {dimensions = array<i32: 0>} : vector<16x128xi32>
    %2 = tpu.iota {dimensions = array<i32: 1>} : vector<16x128xi32>
    %3 = vector.broadcast %0 : i32 to vector<16x128xi32>
    %4 = arith.addi %3, %1 : vector<16x128xi32>
    %c128_i32 = arith.constant 128 : i32
    %5 = vector.broadcast %c128_i32 : i32 to vector<16x128xi32>
    %6 = arith.muli %4, %5 : vector<16x128xi32>
    %7 = arith.addi %6, %2 : vector<16x128xi32>
    %c0 = arith.constant 0 : index
    %8 = memref.load %arg1[%c0] : memref<1xi32, #tpu.memory_space<smem>>
    %c-1640531527_i32 = arith.constant -1640531527 : i32
    %9 = arith.muli %8, %c-1640531527_i32 : i32
    %10 = vector.broadcast %9 : i32 to vector<16x128xi32>
    %11 = arith.addi %7, %10 : vector<16x128xi32>
    %c16_i32_0 = arith.constant 16 : i32
    %12 = vector.broadcast %c16_i32_0 : i32 to vector<16x128xi32>
    %13 = arith.shrui %11, %12 : vector<16x128xi32>
    %14 = arith.xori %11, %13 : vector<16x128xi32>
    %c2146121005_i32 = arith.constant 2146121005 : i32
    %15 = vector.broadcast %c2146121005_i32 : i32 to vector<16x128xi32>
    %16 = arith.muli %14, %15 : vector<16x128xi32>
    %c15_i32 = arith.constant 15 : i32
    %17 = vector.broadcast %c15_i32 : i32 to vector<16x128xi32>
    %18 = arith.shrui %16, %17 : vector<16x128xi32>
    %19 = arith.xori %16, %18 : vector<16x128xi32>
    %c-2073254261_i32 = arith.constant -2073254261 : i32
    %20 = vector.broadcast %c-2073254261_i32 : i32 to vector<16x128xi32>
    %21 = arith.muli %19, %20 : vector<16x128xi32>
    %c16_i32_1 = arith.constant 16 : i32
    %22 = vector.broadcast %c16_i32_1 : i32 to vector<16x128xi32>
    %23 = arith.shrui %21, %22 : vector<16x128xi32>
    %24 = arith.xori %21, %23 : vector<16x128xi32>
    %c-2147483648_i32 = arith.constant -2147483648 : i32
    %25 = vector.broadcast %c-2147483648_i32 : i32 to vector<16x128xi32>
    %26 = arith.cmpi uge, %24, %25 : vector<16x128xi32>
    %c0_2 = arith.constant 0 : index
    %c0_3 = arith.constant 0 : index
    %27 = vector.load %arg2[%c0_2, %c0_3] : memref<16x128xf32, #tpu.memory_space<vmem>>, vector<16x128xf32>
    %cst = arith.constant 2.000000e+00 : f32
    %28 = vector.broadcast %cst : f32 to vector<16x128xf32>
    %29 = arith.mulf %27, %28 : vector<16x128xf32>
    %cst_4 = arith.constant 0.000000e+00 : f32
    %30 = vector.broadcast %cst_4 : f32 to vector<16x128xf32>
    %31 = arith.select %26, %29, %30 : vector<16x128xi1>, vector<16x128xf32>
    %c0_5 = arith.constant 0 : index
    %c0_6 = arith.constant 0 : index
    %32 = vector.load %arg3[%c0_5, %c0_6] : memref<16x128xf32, #tpu.memory_space<vmem>>, vector<16x128xf32>
    tpu.vector_store %arg3[%c0_5, %c0_6], %31 {strides = array<i32>} : memref<16x128xf32, #tpu.memory_space<vmem>>, vector<16x128xf32>,
    return
  }
  func.func @transform_0(%arg0: i32) -> i32 {
    %c0_i32 = arith.constant 0 : i32
    %c0_i32_0 = arith.constant 0 : i32
    return %c0_i32 : i32
  }
  func.func @transform_1(%arg0: i32) -> (i32, i32) {
    %c0_i32 = arith.constant 0 : i32
    %c0_i32_0 = arith.constant 0 : i32
    return %arg0, %c0_i32 : i32, i32
  }
  func.func @transform_2(%arg0: i32) -> (i32, i32) {
    %c0_i32 = arith.constant 0 : i32
    %c0_i32_0 = arith.constant 0 : i32
    return %arg0, %c0_i32 : i32, i32
  }
}

</mosaic_0001>

<bundles_post_ra>
// kernel: tpu_custom_call.1
= control target key start
LH: loop header
LB: loop body
LE: loop exit
PB: predicated region body
PF: predicated region fallthrough
CT: control target
= control target key end

     0   :  { %s654_s0 = inlined_call_operand.<no memory space> [shape: s32[1], index: 0, kind: input, shape index: {}]   ;;  %s655_s1 = inlined_call_operand.hbm [shape: f32[64,128], index: 1, kind: input, shape index: {}]   ;;  %s656_s2 = inlined_call_operand.hbm [shape: f32[64,128], index: 2, kind: output, shape index: {}]  }
   0x1   :  { %7 = sst [smem:[#allocation2]] %s654_s0 }
   0x2   :  { %8 = vsyncpa [#allocation4], 0 }
   0x3   :  { %10 = vsyncpa [#allocation4 + $0x1], 0 }
   0x4   :  { %11 = vsyncpa [#allocation5], 0 }
   0x5   :  { %13 = vsyncpa [#allocation5 + $0x1], 0  ;;  %s485_s11 = smov 0   ;;  %s487_s12 = smov 0  }
   0x6   :  { %s489_s13 = smov 0   ;;  %s491_s14 = smov 0  }
   0x7 LB: > { %s506_s0 = sadd.s32 4294967295, %s459_s14   ;;  %s296_s15 = sadd.s32 4294967294, %s459_s14   ;;  %s459_s14 = sphi %s491_s14, %s668_s14   ;;  %s455_s13 = sphi %s489_s13, %s667_s13   ;;  %s451_s12 = sphi %s487_s12, %s666_s12   ;;  %s447_s11 = sphi %s485_s11, %s665_s11  }
   0x8   : > { %s510_s16 = sadd.s32 1, %s459_s14   ;;  %s47_s17 = sadd.s32 1, %s455_s13 }
   0x9   : > { %s44_s18 = ssub.s32 %s459_s14, %s510_s16  ;;  %p54_p0 = scmp.ne.s32.totalorder %s455_s13, %s451_s12 }
   0xa   : > { %p45_p1 = scmp.eq.s32.totalorder %s44_s18, 0  ;;  %p55_p2 = scmp.eq.s32.totalorder %s459_s14, 0 }
   0xb   : > { %p60_p3 = scmp.ne.s32.totalorder %s451_s12, %s447_s11  ;;  %p61_p4 = scmp.eq.s32.totalorder %s506_s0, 0 }
   0xc   : > { %s522_s19 = scalar_select %p45_p1, %s455_s13, %s47_s17  }
   0xd   : > { %p524_p5 = por %p55_p2, %p54_p0  ;;  %p528_p6 = por %p61_p4, %p60_p3 }
   0xe   : > { %p84_p7 = scmp.eq.s32.totalorder %s506_s0, 3  ;;  %p90_p8 = scmp.eq.s32.totalorder %s296_s15, 3 }
   0xf   : > { %p325_p9 = scmp.lt.s32.totalorder %s459_s14, 4  ;;  %s113_s24 = sand.u32 1, %s455_s13  }
  0x10   : > { %p534_p10 = por %p84_p7, %p54_p0  ;;  %p538_p11 = por %p90_p8, %p60_p3 }
  0x11   : > { %s311_s25 = sshll.u32 %s459_s14, 8  ;;  %s299_s26 = sshll.u32 %s113_s24, 4 }
  0x12   : > { %s660_s22 = scalar_select %p534_p10, 1, 0 }
  0x13   : > { %s661_s23 = scalar_select %p538_p11, 1, 0 }
  0x14   : > { %s547_s29 = scalar_lea.hbm %s655_s1, %s311_s25  ;;  %s117_s30 = scalar_lea.vmem [#allocation3], %s299_s26 }
  0x15   : > { %s124_s3 = sshll.u32 %s117_s30, 4  ;;  %p551_p12 = pnand %p325_p9, %p524_p5  ;;  %s555_s3 = int_to_ptr.vmem [resolvable:$true] %s124_s3 }
  0x16   : > { %s557_s5 = scalar_lea.sflag [#allocation4], %s113_s24  ;;  %s363_s6 = scalar_lea.hbm %s547_s29, 256 }
  0x17   : > { %p364_p13 = scmp.ne.s32.totalorder %s547_s29, %s363_s6  ;;  %p365_p0 = pneg %p551_p12 }
  0x18   : > { %s368_s9 = scalar_lea.hbm %s655_s1, 1024  ;;  %p369_p3 = scmp.lt.u32.totalorder %s547_s29, %s655_s1 }
  0x19   : > { %p366_p1 = pnand %p365_p0, %p364_p13  ;;  %p370_p4 = scmp.lt.u32.totalorder %s368_s9, %s363_s6 }
  0x1a   : > { %p372_p7 = scmp.lt.u32.totalorder %s363_s6, %s547_s29 }
  0x1b   : > { %p367_p2 = pneg %p366_p1  ;;  %p371_p5 = por %p370_p4, %p369_p3 }
  0x1d   : > { %p373_p8 = por %p372_p7, %p371_p5 }
  0x1f   : > { %p374_p9 = pnand %p373_p8, %p367_p2 }
  0x21   : > { %377 = shalt.err (!%p374_p9)
}
  0x22   : > { %s378_s17 = scalar_lea.vmem %s555_s3, 256  ;;  %s461_s18 = smov [#allocation3]  }
  0x23   : > { %p379_p13 = scmp.ne.s32.totalorder %s555_s3, %s378_s17  ;;  %s383_s20 = sshll.u32 %s461_s18, 4  ;;  %s384_s20 = int_to_ptr.vmem [resolvable:$false] %s383_s20 }
  0x24   : > { %s385_s24 = scalar_lea.vmem %s384_s20, 512  ;;  %p386_p10 = scmp.lt.s32.totalorder %s555_s3, %s384_s20 }
  0x25   : > { %p381_p1 = pnand %p379_p13, %p365_p0  ;;  %p387_p3 = scmp.lt.s32.totalorder %s385_s24, %s378_s17 }
  0x27   : > { %p382_p11 = pneg %p381_p1  ;;  %p388_p4 = por %p387_p3, %p386_p10 }
  0x29   : > { %p389_p5 = pnand %p388_p4, %p382_p11 }
  0x2b   : > { %392 = shalt.err (!%p389_p5)
}
  0x2c   : > { %s462_s25 = smov 128   ;;  %s463_s26 = smov 8  }
  0x2d   : > { %320 = dma.hbm_to_vmem [thread:$0]  (!%p551_p12), %s547_s29, 256, %s555_s3, %s557_s5, %s462_s25, %s462_s25, %s463_s26  }
  0x2e   : > { %p302_p0 = scmp.ge.s32.totalorder %s459_s14, 1  ;;  %p132_p2 = scmp.lt.s32.totalorder %s459_s14, 5 }
  0x30   : > { %p133_p7 = pnand %p302_p0, %p132_p2 }
  0x31   : > { %s588_s27 = sand.u32 (!%p133_p7), 1, %s451_s12  }
  0x32   : > { %136 = sbr.rel (%p133_p7) target bundleno = 105 (0x69), region = 28  ;;  %s303_s28 = sshll.u32 (!%p133_p7), %s588_s27, 4 }
  0x33   : > { %s139_s30 = scalar_lea.sflag (!%p133_p7), [#allocation4], %s588_s27  ;;  %s594_s6 = scalar_lea.vmem (!%p133_p7), [#allocation3], %s303_s28 }
  0x39   : > { %438 = dma.done.wait (%p528_p6), %s139_s30, 256  }
  0x3a   : > { %440 = vsyncadd (%p528_p6), %s139_s30, 4294967040  ;;  %s305_s29 = sshll.u32 %s506_s0, 4  ;;  %v166_v0 = vlaneseq  ;;  %s178_s3 = sld [smem:[#allocation2]]  ;;  %v201_v24 = vld [vmem:[%s594_s6] sm:$0xff]  ;;  %v202_v28 = vld [vmem:[%s594_s6 + $0x8] sm:$0xff] }
  0x3b   : > { %v171_v1 = vstv %s305_s29  ;;  %v203_v29 = vmul.f32 2.0, %v201_v24  ;;  %s162_s21 = scalar_lea.vmem [#allocation6], %s303_s28  ;;  %v204_v32 = vmul.f32 2.0, %v202_v28  ;;  %s312_s7 = sshll.u32 %s506_s0, 8 }
  0x3c   : > { %v167_v2 = vshrl.u32 %v166_v0, 7  ;;  %v170_v3 = vand.u32 127, %v166_v0  ;;  %s223_s5 = sshll.u32 %s162_s21, 4  ;;  %s611_s10 = scalar_lea.hbm %s656_s2, %s312_s7  ;;  %s606_s5 = int_to_ptr.vmem [resolvable:$true] %s223_s5 }
  0x3d   : > { %s210_s15 = scalar_lea.sflag [#allocation5], %s588_s27  ;;  %s393_s17 = scalar_lea.vmem %s606_s5, 256 }
  0x3e   : > { %v172_v4 = vadd.s32 %v171_v1, %v167_v2  ;;  %v168_v5 = vadd.s32 8, %v167_v2  ;;  %p394_p6 = scmp.ne.s32.totalorder %s606_s5, %s393_s17  ;;  %p663_p10 = scmp.ne.s32.totalorder %s660_s22, 0 }
  0x3f   : > { %s464_s0 = smov [#allocation6]  }
  0x40   : > { %v174_v6 = vmul.u32 128, %v172_v4  ;;  %v173_v7 = vadd.s32 %v171_v1, %v168_v5  ;;  %s179_s4 = smul.u32 2654435769, %s178_s3  ;;  %p395_p11 = pnand %p394_p6, %p663_p10 }
  0x41   : > { %s397_s18 = sshll.u32 %s464_s0, 4  ;;  %s398_s18 = int_to_ptr.vmem [resolvable:$false] %s397_s18 }
  0x42   : > { %v176_v8 = vadd.s32 %v174_v6, %v170_v3  ;;  %v175_v9 = vmul.u32 128, %v173_v7  ;;  %v180_v10 = vstv %s179_s4  ;;  %p396_p12 = pneg %p395_p11  ;;  %s399_s20 = scalar_lea.vmem %s398_s18, 512 }
  0x43   : > { %p400_p8 = scmp.lt.s32.totalorder %s606_s5, %s398_s18  ;;  %p401_p9 = scmp.lt.s32.totalorder %s399_s20, %s393_s17 }
  0x44   : > { %v181_v11 = vadd.s32 %v180_v10, %v176_v8  ;;  %v177_v12 = vadd.s32 %v175_v9, %v170_v3 }
  0x45   : > { %p402_p13 = por %p401_p9, %p400_p8 }
  0x46   : > { %v183_v13 = vshrl.u32 %v181_v11, 16  ;;  %v182_v14 = vadd.s32 %v180_v10, %v177_v12 }
  0x47   : > { %p403_p1 = pnand %p402_p13, %p396_p12 }
  0x48   : > { %v185_v15 = vxor.u32 %v183_v13, %v181_v11  ;;  %v184_v16 = vshrl.u32 %v182_v14, 16 }
  0x4a   : > { %v187_v17 = vmul.u32 2146121005, %v185_v15  ;;  %v186_v18 = vxor.u32 %v184_v16, %v182_v14 }
  0x4c   : > { %v189_v19 = vshrl.u32 %v187_v17, 15  ;;  %v188_v20 = vmul.u32 2146121005, %v186_v18 }
  0x4e   : > { %v191_v21 = vxor.u32 %v189_v19, %v187_v17  ;;  %v190_v22 = vshrl.u32 %v188_v20, 15 }
  0x50   : > { %v193_v23 = vmul.u32 2221713035, %v191_v21  ;;  %v192_v25 = vxor.u32 %v190_v22, %v188_v20 }
  0x52   : > { %v195_v26 = vshrl.u32 %v193_v23, 16  ;;  %v194_v27 = vmul.u32 2221713035, %v192_v25 }
  0x54   : > { %v197_v30 = vxor.u32 %v195_v26, %v193_v23  ;;  %v196_v31 = vshrl.u32 %v194_v27, 16 }
  0x56   : > { %vm199_vm0 = vcmp.ge.u32.totalorder %v197_v30, 2147483648  ;;  %v198_v33 = vxor.u32 %v196_v31, %v194_v27 }
  0x57   : > { %v205_v34 = vsel %vm199_vm0, %v203_v29, 0.0 }
  0x58   : > { %207 = vst [vmem:[%s162_s21] sm:$0xff] %v205_v34  ;;  %vm200_vm1 = vcmp.ge.u32.totalorder %v198_v33, 2147483648 }
  0x59   : > { %v206_v35 = vsel %vm200_vm1, %v204_v32, 0.0 }
  0x5a   : > { %208 = vst [vmem:[%s162_s21 + $0x8] sm:$0xff] %v206_v35 }
  0x5b   : > { %406 = shalt.err (!%p403_p1)
}
  0x5c   : > { %s407_s24 = scalar_lea.hbm %s611_s10, 256  ;;  %s411_s28 = scalar_lea.hbm %s656_s2, 1024 }
  0x5d   : > { %p408_p3 = scmp.ne.s32.totalorder %s611_s10, %s407_s24  ;;  %p412_p0 = scmp.lt.u32.totalorder %s611_s10, %s656_s2 }
  0x5e   : > { %p413_p2 = scmp.lt.u32.totalorder %s411_s28, %s407_s24  ;;  %p415_p6 = scmp.lt.u32.totalorder %s407_s24, %s611_s10 }
  0x5f   : > { %p409_p4 = pnand %p408_p3, %p663_p10 }
  0x60   : > { %p414_p7 = por %p413_p2, %p412_p0 }
  0x61   : > { %p410_p5 = pneg %p409_p4 }
  0x62   : > { %p416_p11 = por %p415_p6, %p414_p7 }
  0x64   : > { %p417_p12 = pnand %p416_p11, %p410_p5 }
  0x66   : > { %420 = shalt.err (!%p417_p12)
}
  0x67   : > { %s465_s29 = smov 128   ;;  %s466_s3 = smov 8  }
  0x68   : > { %315 = dma.vmem_to_hbm [thread:$0]  (%p663_p10), %s606_s5, 256, %s611_s10, %s210_s15, %s465_s29, %s465_s29, %s466_s3  }
  0x69 PF: > { %p326_p8 = scmp.ge.s32.totalorder %s459_s14, 2  ;;  %s238_s4 = sand.u32 1, %s447_s11  }
  0x6a   : > { %p664_p9 = scmp.ne.s32.totalorder %s661_s23, 0  ;;  %s239_s21 = scalar_lea.sflag [#allocation5], %s238_s4 }
  0x6c   : > { %p322_p13 = pnand %p326_p8, %p664_p9 }
  0x6e   : > { %442 = dma.done.wait (!%p322_p13), %s239_s21, 256  }
  0x6f   : > { %444 = vsyncadd (!%p322_p13), %s239_s21, 4294967040  ;;  %p16_p1 = scmp.ge.s32.totalorder %s510_s16, 6   ;;  %s665_s11 = smov %s451_s12 }
  0x70   : > { %s666_s12 = smov %s455_s13  ;;  %s667_s13 = smov %s522_s19 }
  0x71   : > { %s668_s14 = smov %s510_s16  ;;  %18 = sbr.rel (!%p16_p1) target bundleno = 7 (0x7), region = 73 }
  0x78   :  { %244 = vsyncpa [#allocation4], 1 }
  0x79   :  { %246 = vsyncpa [#allocation4 + $0x1], 1 }
  0x7a   :  { %247 = vsyncpa [#allocation5], 1 }
  0x7b   :  { %249 = vsyncpa [#allocation5 + $0x1], 1 }

</bundles_post_ra>
